<compile_context>
chip_gen: v7x
topology: tpu7x:2x2x1
jax: 0.10.0
libtpu: 0.0.40
codegen_flags: <defaults>
</compile_context>

<pallas_src>
from functools import partial

import jax
import jax.numpy as jnp
from jax import lax
from jax.experimental import pallas as pl
from jax.experimental.pallas import tpu as pltpu


def _clone_structure_kernel(x_ref, w1_ref, b1_ref, w2_ref, b2_ref,
                            w3_ref, b3_ref, o_ref, *, n_valid):
    x = x_ref[...].astype(jnp.float32)

    # Linear 1 + ReLU   (Dropout -> identity in eval mode)
    h1 = jnp.dot(x, w1_ref[...], preferred_element_type=jnp.float32) + b1_ref[...]
    h1 = jnp.maximum(h1, 0.0)

    # Linear 2 + ReLU   (Dropout -> identity in eval mode)
    h2 = jnp.dot(h1, w2_ref[...], preferred_element_type=jnp.float32) + b2_ref[...]
    h2 = jnp.maximum(h2, 0.0)

    # Linear 3 -> logits (output-feature axis is lane-padded to 128 in the
    # wrapper; mask the padded lanes so the log-softmax stays exact).
    logits = jnp.dot(h2, w3_ref[...], preferred_element_type=jnp.float32) + b3_ref[...]
    lane = lax.broadcasted_iota(jnp.int32, logits.shape, 1)
    logits = jnp.where(lane < n_valid, logits, jnp.float32(-1e30))

    # LogSoftmax over dim=1 (the n_actions axis), numerically stable.
    m = jnp.max(logits, axis=1, keepdims=True)
    shifted = logits - m
    lse = jnp.log(jnp.sum(jnp.exp(shifted), axis=1, keepdims=True))
    o_ref[...] = (shifted - lse).astype(o_ref.dtype)


def clone_structure_forward(x, params, *, batch_tile=512):
    """x: (B, input_size) float32.  params: dict of w1,b1,w2,b2,w3,b3."""
    B, D = x.shape
    H = params["w1"].shape[1]
    A = params["w3"].shape[1]

    # ---- lane-dense output: pad the n_actions axis up to a multiple of 128.
    A_pad = max(128, ((A + 127) // 128) * 128)
    w3 = params["w3"]
    b3 = params["b3"]
    if A_pad != A:
        w3 = jnp.pad(w3, ((0, 0), (0, A_pad - A)))
        b3 = jnp.pad(b3, ((0, 0), (0, A_pad - A)))

    # ---- batch tiling: as large as fits the batch (multiple of 8 sublanes),
    #      but keep >=2 grid steps when possible so v7x's 2 TensorCores can
    #      both take "parallel" grid work.
    tile = min(batch_tile, B)
    tile = max(8, (tile // 8) * 8)
    B_pad = -(-B // tile) * tile
    if B_pad // tile == 1 and tile >= 16:
        tile = max(8, ((tile // 2) // 8) * 8)
        B_pad = -(-B // tile) * tile

    if B_pad != B:
        x = jnp.pad(x, ((0, B_pad - B), (0, 0)))

    grid = (B_pad // tile,)

    full = lambda shape: pl.BlockSpec(shape, lambda i: (0, 0))

    cost = pl.CostEstimate(
        flops=2 * B_pad * (D * H + H * H + H * A_pad),
        transcendentals=B_pad * (A_pad + 1),
        bytes_accessed=4 * (B_pad * D + B_pad * A_pad
                            + D * H + H + H * H + H + H * A_pad + A_pad),
    )

    out = pl.pallas_call(
        partial(_clone_structure_kernel, n_valid=A),
        out_shape=jax.ShapeDtypeStruct((B_pad, A_pad), jnp.float32),
        grid_spec=pltpu.PrefetchScalarGridSpec(
            num_scalar_prefetch=0,
            grid=grid,
            in_specs=[
                pl.BlockSpec((tile, D), lambda i: (i, 0)),  # x (tiled on batch)
                full((D, H)),                               # w1
                full((1, H)),                               # b1
                full((H, H)),                               # w2
                full((1, H)),                               # b2
                full((H, A_pad)),                           # w3 (lane-padded)
                full((1, A_pad)),                           # b3 (lane-padded)
            ],
            out_specs=pl.BlockSpec((tile, A_pad), lambda i: (i, 0)),
        ),
        compiler_params=pltpu.CompilerParams(
            dimension_semantics=("parallel",)),
        cost_estimate=cost,
    )(x, params["w1"], params["b1"], params["w2"], params["b2"], w3, b3)

    return out[:B, :A]


def init_params(key, input_size, hidden_layer_size, n_actions):
    """Deterministic synthetic params (PyTorch-Linear-like uniform init)."""
    ks = jax.random.split(key, 6)

    def linear(kw, kb, fan_in, fan_out):
        bound = 1.0 / jnp.sqrt(jnp.float32(fan_in))
        w = jax.random.uniform(kw, (fan_in, fan_out), jnp.float32, -bound, bound)
        b = jax.random.uniform(kb, (1, fan_out), jnp.float32, -bound, bound)
        return w, b

    w1, b1 = linear(ks[0], ks[1], input_size, hidden_layer_size)
    w2, b2 = linear(ks[2], ks[3], hidden_layer_size, hidden_layer_size)
    w3, b3 = linear(ks[4], ks[5], hidden_layer_size, n_actions)
    return dict(w1=w1, b1=b1, w2=w2, b2=b2, w3=w3, b3=b3)


if __name__ == "__main__":
    INPUT_SIZE = 32
    HIDDEN = 32
    N_ACTIONS = 8
    BATCH = 256   # exercises the tiling path: 2 grid steps of 128 rows each

    key = jax.random.PRNGKey(0)
    k_x, k_p = jax.random.split(key)
    x = jax.random.normal(k_x, (BATCH, INPUT_SIZE), jnp.float32)
    params = init_params(k_p, INPUT_SIZE, HIDDEN, N_ACTIONS)

    out = clone_structure_forward(x, params)
    out = jax.block_until_ready(out)

    # Sanity: pure-JAX reference (eval-mode dropout = identity).
    h1 = jnp.maximum(x @ params["w1"] + params["b1"], 0.0)
    h2 = jnp.maximum(h1 @ params["w2"] + params["b2"], 0.0)
    logits = h2 @ params["w3"] + params["b3"]
    ref = jax.nn.log_softmax(logits, axis=1)
    assert out.shape == ref.shape, "shape mismatch vs reference"
    assert jnp.allclose(out, ref, atol=1e-5, rtol=1e-5), "mismatch vs reference"

    print("KERNEL_OK")
</pallas_src>

<mosaic_0001>
module attributes {stable_mosaic.version = 11 : i64} {
  func.func @_clone_structure_kernel(%arg0: i32, %arg1: memref<128x32xf32, #tpu.memory_space<vmem>>, %arg2: memref<32x32xf32, #tpu.memory_space<vmem>>, %arg3: memref<1x32xf32, #tpu.memory_space<vmem>>, %arg4: memref<32x32xf32, #tpu.memory_space<vmem>>, %arg5: memref<1x32xf32, #tpu.memory_space<vmem>>, %arg6: memref<32x128xf32, #tpu.memory_space<vmem>>, %arg7: memref<1x128xf32, #tpu.memory_space<vmem>>, %arg8: memref<128x128xf32, #tpu.memory_space<vmem>>) attributes {dimension_semantics = [#tpu.dimension_semantics<parallel>], iteration_bounds = array<i64: 2>, scalar_prefetch = 0 : i64, scratch_operands = 0 : i64, tpu.core_type = #tpu.core_type<tc>, window_params = [{transform_indices = @transform_0, window_bounds = array<i64: 128, 32>}, {pipeline_mode = #tpu.pipeline_mode<synchronous>, transform_indices = @transform_1, window_bounds = array<i64: 32, 32>}, {pipeline_mode = #tpu.pipeline_mode<synchronous>, transform_indices = @transform_2, window_bounds = array<i64: 1, 32>}, {pipeline_mode = #tpu.pipeline_mode<synchronous>, transform_indices = @transform_3, window_bounds = array<i64: 32, 32>}, {pipeline_mode = #tpu.pipeline_mode<synchronous>, transform_indices = @transform_4, window_bounds = array<i64: 1, 32>}, {pipeline_mode = #tpu.pipeline_mode<synchronous>, transform_indices = @transform_5, window_bounds = array<i64: 32, 128>}, {pipeline_mode = #tpu.pipeline_mode<synchronous>, transform_indices = @transform_6, window_bounds = array<i64: 1, 128>}, {transform_indices = @transform_7, window_bounds = array<i64: 128, 128>}]} {
    %c0 = arith.constant 0 : index
    %c0_0 = arith.constant 0 : index
    %0 = vector.load %arg1[%c0, %c0_0] : memref<128x32xf32, #tpu.memory_space<vmem>>, vector<128x32xf32>
    %c0_1 = arith.constant 0 : index
    %c0_2 = arith.constant 0 : index
    %1 = vector.load %arg2[%c0_1, %c0_2] : memref<32x32xf32, #tpu.memory_space<vmem>>, vector<32x32xf32>
    %cst = arith.constant dense<0.000000e+00> : vector<128x32xf32>
    %2 = tpu.matmul %0, %1, %cst {dimension_numbers = #tpu.dot_dimension_numbers<[1], [0], [0], [1], [0, 0, 1, 1], [], []>} : vector<128x32xf32>, vector<32x32xf32>, vector<128x32xf32> -> vector<128x32xf32>
    %c0_3 = arith.constant 0 : index
    %c0_4 = arith.constant 0 : index
    %3 = vector.load %arg3[%c0_3, %c0_4] : memref<1x32xf32, #tpu.memory_space<vmem>>, vector<1x32xf32>
    %4 = vector.broadcast %3 : vector<1x32xf32> to vector<128x32xf32>
    %5 = arith.addf %2, %4 : vector<128x32xf32>
    %cst_5 = arith.constant 0.000000e+00 : f32
    %6 = vector.broadcast %cst_5 : f32 to vector<128x32xf32>
    %7 = arith.maximumf %5, %6 : vector<128x32xf32>
    %c0_6 = arith.constant 0 : index
    %c0_7 = arith.constant 0 : index
    %8 = vector.load %arg4[%c0_6, %c0_7] : memref<32x32xf32, #tpu.memory_space<vmem>>, vector<32x32xf32>
    %cst_8 = arith.constant dense<0.000000e+00> : vector<128x32xf32>
    %9 = tpu.matmul %7, %8, %cst_8 {dimension_numbers = #tpu.dot_dimension_numbers<[1], [0], [0], [1], [0, 0, 1, 1], [], []>} : vector<128x32xf32>, vector<32x32xf32>, vector<128x32xf32> -> vector<128x32xf32>
    %c0_9 = arith.constant 0 : index
    %c0_10 = arith.constant 0 : index
    %10 = vector.load %arg5[%c0_9, %c0_10] : memref<1x32xf32, #tpu.memory_space<vmem>>, vector<1x32xf32>
    %11 = vector.broadcast %10 : vector<1x32xf32> to vector<128x32xf32>
    %12 = arith.addf %9, %11 : vector<128x32xf32>
    %cst_11 = arith.constant 0.000000e+00 : f32
    %13 = vector.broadcast %cst_11 : f32 to vector<128x32xf32>
    %14 = arith.maximumf %12, %13 : vector<128x32xf32>
    %c0_12 = arith.constant 0 : index
    %c0_13 = arith.constant 0 : index
    %15 = vector.load %arg6[%c0_12, %c0_13] : memref<32x128xf32, #tpu.memory_space<vmem>>, vector<32x128xf32>
    %cst_14 = arith.constant dense<0.000000e+00> : vector<128x128xf32>
    %16 = tpu.matmul %14, %15, %cst_14 {dimension_numbers = #tpu.dot_dimension_numbers<[1], [0], [0], [1], [0, 0, 1, 1], [], []>} : vector<128x32xf32>, vector<32x128xf32>, vector<128x128xf32> -> vector<128x128xf32>
    %c0_15 = arith.constant 0 : index
    %c0_16 = arith.constant 0 : index
    %17 = vector.load %arg7[%c0_15, %c0_16] : memref<1x128xf32, #tpu.memory_space<vmem>>, vector<1x128xf32>
    %18 = vector.broadcast %17 : vector<1x128xf32> to vector<128x128xf32>
    %19 = arith.addf %16, %18 : vector<128x128xf32>
    %20 = tpu.iota {dimensions = array<i32: 1>} : vector<128x128xi32>
    %c8_i32 = arith.constant 8 : i32
    %21 = vector.broadcast %c8_i32 : i32 to vector<128x128xi32>
    %22 = arith.cmpi slt, %20, %21 : vector<128x128xi32>
    %cst_17 = arith.constant -1.000000e+30 : f32
    %23 = vector.broadcast %cst_17 : f32 to vector<128x128xf32>
    %24 = arith.select %22, %19, %23 : vector<128x128xi1>, vector<128x128xf32>
    %cst_18 = arith.constant dense<0xFF800000> : vector<128xf32>
    %25 = vector.multi_reduction <maximumf>, %24, %cst_18 [1] : vector<128x128xf32> to vector<128xf32>
    %26 = vector.shape_cast %25 : vector<128xf32> to vector<128x1xf32>
    %27 = vector.broadcast %26 : vector<128x1xf32> to vector<128x128xf32>
    %28 = arith.subf %24, %27 : vector<128x128xf32>
    %29 = math.exp %28 : vector<128x128xf32>
    %cst_19 = arith.constant dense<0.000000e+00> : vector<128xf32>
    %30 = vector.multi_reduction <add>, %29, %cst_19 [1] : vector<128x128xf32> to vector<128xf32>
    %31 = vector.shape_cast %30 : vector<128xf32> to vector<128x1xf32>
    %32 = math.log %31 : vector<128x1xf32>
    %33 = vector.broadcast %32 : vector<128x1xf32> to vector<128x128xf32>
    %34 = arith.subf %28, %33 : vector<128x128xf32>
    %c0_20 = arith.constant 0 : index
    %c0_21 = arith.constant 0 : index
    %35 = vector.load %arg8[%c0_20, %c0_21] : memref<128x128xf32, #tpu.memory_space<vmem>>, vector<128x128xf32>
    tpu.vector_store %arg8[%c0_20, %c0_21], %34 {strides = array<i32>} : memref<128x128xf32, #tpu.memory_space<vmem>>, vector<128x128xf32>,
    return
  }
  func.func @transform_0(%arg0: i32) -> (i32, i32) {
    %c0_i32 = arith.constant 0 : i32
    %c0_i32_0 = arith.constant 0 : i32
    return %arg0, %c0_i32 : i32, i32
  }
  func.func @transform_1(%arg0: i32) -> (i32, i32) {
    %c0_i32 = arith.constant 0 : i32
    %c0_i32_0 = arith.constant 0 : i32
    %c0_i32_1 = arith.constant 0 : i32
    return %c0_i32, %c0_i32_0 : i32, i32
  }
  func.func @transform_2(%arg0: i32) -> (i32, i32) {
    %c0_i32 = arith.constant 0 : i32
    %c0_i32_0 = arith.constant 0 : i32
    %c0_i32_1 = arith.constant 0 : i32
    return %c0_i32, %c0_i32_0 : i32, i32
  }
  func.func @transform_3(%arg0: i32) -> (i32, i32) {
    %c0_i32 = arith.constant 0 : i32
    %c0_i32_0 = arith.constant 0 : i32
    %c0_i32_1 = arith.constant 0 : i32
    return %c0_i32, %c0_i32_0 : i32, i32
  }
  func.func @transform_4(%arg0: i32) -> (i32, i32) {
    %c0_i32 = arith.constant 0 : i32
    %c0_i32_0 = arith.constant 0 : i32
    %c0_i32_1 = arith.constant 0 : i32
    return %c0_i32, %c0_i32_0 : i32, i32
  }
  func.func @transform_5(%arg0: i32) -> (i32, i32) {
    %c0_i32 = arith.constant 0 : i32
    %c0_i32_0 = arith.constant 0 : i32
    %c0_i32_1 = arith.constant 0 : i32
    return %c0_i32, %c0_i32_0 : i32, i32
  }
  func.func @transform_6(%arg0: i32) -> (i32, i32) {
    %c0_i32 = arith.constant 0 : i32
    %c0_i32_0 = arith.constant 0 : i32
    %c0_i32_1 = arith.constant 0 : i32
    return %c0_i32, %c0_i32_0 : i32, i32
  }
  func.func @transform_7(%arg0: i32) -> (i32, i32) {
    %c0_i32 = arith.constant 0 : i32
    %c0_i32_0 = arith.constant 0 : i32
    return %arg0, %c0_i32 : i32, i32
  }
}

</mosaic_0001>

<bundles_post_ra>
// kernel: tpu_custom_call.1
= control target key start
LH: loop header
LB: loop body
LE: loop exit
PB: predicated region body
PF: predicated region fallthrough
CT: control target
= control target key end

     0   :  { %12 = vsyncpa [#allocation3], 0  ;;  %s2031_s0 = inlined_call_operand.vmem [shape: f32[256,32], index: 0, kind: input, shape index: {}]   ;;  %s2032_s1 = inlined_call_operand.vmem [shape: f32[32,32], index: 1, kind: input, shape index: {}]   ;;  %s2033_s2 = inlined_call_operand.vmem [shape: f32[1,32], index: 2, kind: input, shape index: {}]   ;;  %s2034_s3 = inlined_call_operand.vmem [shape: f32[32,32], index: 3, kind: input, shape index: {}]   ;;  %s2035_s4 = inlined_call_operand.vmem [shape: f32[1,32], index: 4, kind: input, shape index: {}]   ;;  %s2036_s5 = inlined_call_operand.vmem [shape: f32[32,128], index: 5, kind: input, shape index: {}]   ;;  %s2037_s6 = inlined_call_operand.vmem [shape: f32[1,128], index: 6, kind: input, shape index: {}]   ;;  %s2038_s7 = inlined_call_operand.hbm [shape: f32[256,128], index: 7, kind: output, shape index: {}]  }
   0x1   :  { %14 = vsyncpa [#allocation3 + $0x1], 0  ;;  %s1672_s24 = smov 0   ;;  %s1674_s25 = smov 0  }
   0x2   :  { %s1676_s26 = smov 0   ;;  %s1678_s27 = smov 0  }
   0x3 LB: > { %s1693_s28 = sadd.s32 4294967295, %s1627_s27   ;;  %s1212_s29 = sadd.s32 4294967294, %s1627_s27   ;;  %s1627_s27 = sphi %s1678_s27, %s2044_s27   ;;  %s1623_s26 = sphi %s1676_s26, %s2043_s26   ;;  %s1619_s25 = sphi %s1674_s25, %s2042_s25   ;;  %s1615_s24 = sphi %s1672_s24, %s2041_s24  }
   0x4   : > { %s1697_s30 = sadd.s32 1, %s1627_s27   ;;  %s179_s8 = sadd.s32 1, %s1623_s26 }
   0x5   : > { %s176_s9 = ssub.s32 %s1627_s27, %s1697_s30  ;;  %p189_p0 = scmp.ne.s32.totalorder %s1623_s26, %s1619_s25 }
   0x6   : > { %p177_p1 = scmp.eq.s32.totalorder %s176_s9, 0  ;;  %p190_p2 = scmp.eq.s32.totalorder %s1693_s28, 1 }
   0x7   : > { %p195_p3 = scmp.ne.s32.totalorder %s1619_s25, %s1615_s24  ;;  %p196_p4 = scmp.eq.s32.totalorder %s1212_s29, 1 }
   0x8   : > { %s1708_s10 = scalar_select %p177_p1, %s1623_s26, %s179_s8  }
   0x9   : > { %p1710_p5 = por %p190_p2, %p189_p0  ;;  %p1714_p6 = por %p196_p4, %p195_p3 }
   0xa   : > { %p1215_p7 = scmp.ge.s32.totalorder %s1627_s27, 1  ;;  %p241_p8 = scmp.lt.s32.totalorder %s1627_s27, 3 }
   0xc   : > { %p242_p9 = pnand %p1215_p7, %p241_p8 }
   0xd   : > { %v296_v0 = vld [vmem:[%s2032_s1] sm:$0xff] (!%p242_p9)  ;;  %v297_v1 = vld [vmem:[%s2032_s1 + $0x8] sm:$0xff] (!%p242_p9)  ;;  %v298_v2 = vld [vmem:[%s2032_s1 + $0x10] sm:$0xff] (!%p242_p9)  ;;  %s1217_s19 = sshll.u32 (!%p242_p9), %s1693_s28, 4  ;;  %vm307_vm0 = vcmask (!%p242_p9), 261120   ;;  %s270_s20 = sand.u32 (!%p242_p9), 1, %s1619_s25  }
   0xe   : > { %245 = sbr.rel (%p242_p9) target bundleno = 1039 (0x40f), region = 48  ;;  %v1432_v3 = vpack.c.bf16 (!%p242_p9), %v297_v1, %v296_v0  ;;  %v299_v4 = vld [vmem:[%s2032_s1 + $0x18] sm:$0xff] (!%p242_p9)  ;;  %p274_p10 = scmp.lt.s32.totalorder (!%p242_p9), %s1217_s19, 31  ;;  %v517_v6 = vld [vmem:[%s2034_s3] sm:$0xff] (!%p242_p9)  ;;  %v518_v7 = vld [vmem:[%s2034_s3 + $0x8] sm:$0xff] (!%p242_p9) }
   0xf   : > { %v1436_v5 = vpack.c.bf16 (!%p242_p9), %v299_v4, %v298_v2  ;;  %v1440_v8 = vpack.c.bf16 (!%p242_p9), %v518_v7, %v517_v6  ;;  %v519_v10 = vld [vmem:[%s2034_s3 + $0x10] sm:$0xff] (!%p242_p9)  ;;  %v520_v11 = vld [vmem:[%s2034_s3 + $0x18] sm:$0xff] (!%p242_p9)  ;;  %v737_v28 = vld [vmem:[%s2036_s5] sm:$0xff] (!%p242_p9)  ;;  %s1216_s21 = sshll.u32 (!%p242_p9), %s270_s20, 7  ;;  %s1275_s23 = sshll.u32 (!%p242_p9), %s1693_s28, 11 }
  0x10   : > { %1433 = vmatprep.subr.bf16.mxu0 (!%p242_p9), %v1432_v3  ;;  %1456 = vmatprep.subr.bf16.mxu1 (!%p242_p9), %v1432_v3  ;;  %v1444_v17 = vpack.c.bf16 (!%p242_p9), %v520_v11, %v519_v10  ;;  %v738_v29 = vld [vmem:[%s2036_s5 + $0x8] sm:$0xff] (!%p242_p9)  ;;  %v739_v30 = vld [vmem:[%s2036_s5 + $0x10] sm:$0xff] (!%p242_p9)  ;;  %v740_v32 = vld [vmem:[%s2036_s5 + $0x18] sm:$0xff] (!%p242_p9)  ;;  %s1946_s22 = scalar_lea.vmem (!%p242_p9), [#allocation2], %s1216_s21  ;;  %s1981_s13 = scalar_lea.hbm (!%p242_p9), %s2038_s7, %s1275_s23 }
  0x11   : > { %1435 = vmatpush3.bf16.msra.mxu0 (!%p242_p9), %v1432_v3  ;;  %1458 = vmatpush3.bf16.msra.mxu1 (!%p242_p9), %v1432_v3  ;;  %v1448_v31 = vpack.c.bf16 (!%p242_p9), %v738_v29, %v737_v28  ;;  %v1452_v33 = vpack.c.bf16 (!%p242_p9), %v740_v32, %v739_v30  ;;  %v1219_v34 = vld [vmem:[%s2033_s2] ss:$0 sm:$0xff] (!%p242_p9)  ;;  %s1150_s29 = sshll.u32 (!%p242_p9), %s1946_s22, 4  ;;  %s1990_s28 = scalar_lea.sflag (!%p242_p9), [#allocation3], %s270_s20  ;;  %s1983_s29 = int_to_ptr.vmem [resolvable:$true] %s1150_s29 }
  0x12   : > { %1437 = vmatprep.subr.bf16.mxu0 (!%p242_p9), %v1436_v5  ;;  %1457 = vmatprep.subr.bf16.mxu1 (!%p242_p9), %v1436_v5  ;;  %s1565_s14 = scalar_lea.vmem (!%p242_p9), %s1983_s29, 2048 }
  0x13   : > { %p1566_p11 = scmp.ne.s32.totalorder (!%p242_p9), %s1983_s29, %s1565_s14 }
  0x15   : > { %s2046_s19 = smov (!%p274_p10, %s1217_s19), 31  ;;  %1439 = vmatpush3.bf16.msra.mxu0 %v1436_v5  ;;  %1459 = vmatpush3.bf16.msra.mxu1 %v1436_v5  ;;  %p1567_p12 = pnand %p1566_p11, %p1710_p5 }
  0x16   : > { %s1218_s9 = sshll.u32 %s2046_s19, 3  ;;  %1441 = vmatprep.subr.bf16.mxu1 %v1440_v8  ;;  %1449 = vmatprep.subr.bf16.mxu0 %v1448_v31 }
  0x17   : > { %s1742_s15 = scalar_lea.vmem %s2031_s0, %s1218_s9  ;;  %p1568_p13 = pneg %p1567_p12 }
  0x18   : > { %v280_v9 = vld [vmem:[%s1742_s15] sm:$0xff]  ;;  %v281_v12 = vld [vmem:[%s1742_s15 + $0x8] sm:$0xff]  ;;  %v282_v13 = vld [vmem:[%s1742_s15 + $0x10] sm:$0xff] }
  0x19   : > { %1344 = vmatprep.mubr.msk.f32.mxu0 %vm307_vm0, %v280_v9  ;;  %v288_v14 = vld [vmem:[%s1742_s15 + $0x40] sm:$0xff]  ;;  %v289_v15 = vld [vmem:[%s1742_s15 + $0x48] sm:$0xff]  ;;  %v290_v16 = vld [vmem:[%s1742_s15 + $0x50] sm:$0xff] }
  0x1a   : > { %1356 = vmatprep.mubr.msk.f32.mxu1 %vm307_vm0, %v288_v14  ;;  %1345 = vmatmul.mubr.msk.f32.vlgmr.msra.gmra.mrb[0].mxu0 %vm307_vm0, %v281_v12  ;;  %v283_v18 = vld [vmem:[%s1742_s15 + $0x18] sm:$0xff]  ;;  %v284_v19 = vld [vmem:[%s1742_s15 + $0x20] sm:$0xff]  ;;  %v285_v22 = vld [vmem:[%s1742_s15 + $0x28] sm:$0xff] }
  0x1b   : > { %1347 = vmatprep.mubr.msk.f32.mxu0 %vm307_vm0, %v282_v13  ;;  %1357 = vmatmul.mubr.msk.f32.vlgmr.msra.gmra.mrb[0].mxu1 %vm307_vm0, %v289_v15  ;;  %v291_v20 = vld [vmem:[%s1742_s15 + $0x58] sm:$0xff]  ;;  %v292_v21 = vld [vmem:[%s1742_s15 + $0x60] sm:$0xff]  ;;  %v286_v23 = vld [vmem:[%s1742_s15 + $0x30] sm:$0xff] }
  0x1c   : > { %1359 = vmatprep.mubr.msk.f32.mxu1 %vm307_vm0, %v290_v16  ;;  %1443 = vmatpush3.bf16.msra.mxu1 %v1440_v8  ;;  %v293_v24 = vld [vmem:[%s1742_s15 + $0x68] sm:$0xff]  ;;  %v294_v25 = vld [vmem:[%s1742_s15 + $0x70] sm:$0xff]  ;;  %v287_v26 = vld [vmem:[%s1742_s15 + $0x38] sm:$0xff] }
  0x1d   : > { %1445 = vmatprep.subr.bf16.mxu1 %v1444_v17  ;;  %v295_v27 = vld [vmem:[%s1742_s15 + $0x78] sm:$0xff]  ;;  %1451 = vmatpush3.bf16.msra.mxu0 %v1448_v31  ;;  %s1629_s15 = smov [#allocation2]  }
  0x1e   : > { %1348 = vmatmul.mubr.msk.f32.gmra.mrb[2].mxu0 %vm307_vm0, %v283_v18  ;;  %1453 = vmatprep.subr.bf16.mxu0 %v1452_v33  ;;  %s1569_s16 = sshll.u32 %s1629_s15, 4  ;;  %s1570_s16 = int_to_ptr.vmem [resolvable:$false] %s1569_s16 }
  0x1f   : > { %1350 = vmatprep.mubr.msk.f32.mxu0 %vm307_vm0, %v284_v19  ;;  %1360 = vmatmul.mubr.msk.f32.gmra.mrb[2].mxu1 %vm307_vm0, %v291_v20  ;;  %v1236_v19 = vld [vmem:[%s2035_s4] ss:$0 sm:$0xff]  ;;  %s1571_s17 = scalar_lea.vmem %s1570_s16, 4096  ;;  %p1572_p0 = scmp.lt.s32.totalorder %s1983_s29, %s1570_s16 }
  0x20   : > { %1362 = vmatprep.mubr.msk.f32.mxu1 %vm307_vm0, %v292_v21  ;;  %1447 = vmatpush3.bf16.msra.mxu1 %v1444_v17  ;;  %p1573_p1 = scmp.lt.s32.totalorder %s1571_s17, %s1565_s14 }
  0x21   : > { %1455 = vmatpush3.bf16.msra.mxu0 %v1452_v33 }
  0x22   : > { %1351 = vmatmul.mubr.msk.f32.gmra.mrb[4].mxu0 %vm307_vm0, %v285_v22  ;;  %p1574_p2 = por %p1573_p1, %p1572_p0 }
  0x23   : > { %1353 = vmatprep.mubr.msk.f32.mxu0 %vm307_vm0, %v286_v23  ;;  %1363 = vmatmul.mubr.msk.f32.gmra.mrb[4].mxu1 %vm307_vm0, %v293_v24 }
  0x24   : > { %1365 = vmatprep.mubr.msk.f32.mxu1 %vm307_vm0, %v294_v25  ;;  %p1575_p3 = pnand %p1574_p2, %p1568_p13 }
  0x26   : > { %1354 = vmatmul.mubr.msk.f32.gmra.mrb[6].mxu0 %vm307_vm0, %v287_v26 }
  0x27   : > { %1366 = vmatmul.mubr.msk.f32.gmra.mrb[6].mxu1 %vm307_vm0, %v295_v27 }
  0xed   : > { %v1346_v35 = vpop.f32.mrb[0].mxu0 }
  0xee   : > { %v428_v36 = vadd.f32 %v1346_v35, %v1219_v34  ;;  %v422_v37 = vpop.f32.mrb[1].mxu0  ;;  %v1358_v38 = vpop.f32.mrb[0].mxu1 }
  0xef   : > { %v423_v39 = vadd.f32 %v1219_v34, %v422_v37  ;;  %v462_v40 = vpop.f32.mrb[1].mxu1  ;;  %v468_v3 = vadd.f32 %v1358_v38, %v1219_v34 }
  0xf0   : > { %v502_v43 = vmax.f32 %v428_v36, 0.0  ;;  %v463_v60 = vadd.f32 %v1219_v34, %v462_v40 }
  0xf1   : > { %v501_v41 = vmax.f32 %v423_v39, 0.0  ;;  %v1349_v42 = vpop.f32.mrb[2].mxu0  ;;  %v510_v7 = vmax.f32 %v468_v3, 0.0 }
  0xf2   : > { %v438_v44 = vadd.f32 %v1349_v42, %v1219_v34  ;;  %v432_v45 = vpop.f32.mrb[3].mxu0  ;;  %v1361_v46 = vpop.f32.mrb[2].mxu1  ;;  %v509_v5 = vmax.f32 %v463_v60, 0.0 }
  0xf3   : > { %v433_v47 = vadd.f32 %v1219_v34, %v432_v45  ;;  %1376 = vmatprep.mubr.msk.f32.mxu1 %vm307_vm0, %v501_v41  ;;  %v472_v48 = vpop.f32.mrb[3].mxu1  ;;  %v478_v8 = vadd.f32 %v1361_v46, %v1219_v34 }
  0xf4   : > { %1377 = vmatmul.mubr.msk.f32.vlgmr.msra.gmra.mrb[8].mxu1 %vm307_vm0, %v502_v43  ;;  %v504_v51 = vmax.f32 %v438_v44, 0.0  ;;  %v473_v6 = vadd.f32 %v1219_v34, %v472_v48 }
  0xf5   : > { %v503_v49 = vmax.f32 %v433_v47, 0.0  ;;  %v1352_v50 = vpop.f32.mrb[4].mxu0  ;;  %v512_v11 = vmax.f32 %v478_v8, 0.0 }
  0xf6   : > { %v448_v52 = vadd.f32 %v1352_v50, %v1219_v34  ;;  %v442_v53 = vpop.f32.mrb[5].mxu0  ;;  %v1364_v54 = vpop.f32.mrb[4].mxu1  ;;  %v511_v9 = vmax.f32 %v473_v6, 0.0  ;;  %v1253_v6 = vld [vmem:[%s2037_s6] ss:$0 sm:$0xff] }
  0xf7   : > { %v443_v55 = vadd.f32 %v1219_v34, %v442_v53  ;;  %1379 = vmatprep.mubr.msk.f32.mxu1 %vm307_vm0, %v503_v49  ;;  %v482_v56 = vpop.f32.mrb[5].mxu1  ;;  %v488_v12 = vadd.f32 %v1364_v54, %v1219_v34 }
  0xf8   : > { %v506_v57 = vmax.f32 %v448_v52, 0.0  ;;  %1380 = vmatmul.mubr.msk.f32.gmra.mrb[10].mxu1 %vm307_vm0, %v504_v51  ;;  %v483_v10 = vadd.f32 %v1219_v34, %v482_v56 }
  0xf9   : > { %v505_v58 = vmax.f32 %v443_v55, 0.0  ;;  %v1355_v59 = vpop.f32.mrb[6].mxu0  ;;  %v514_v15 = vmax.f32 %v488_v12, 0.0 }
  0xfa   : > { %v458_v61 = vadd.f32 %v1355_v59, %v1219_v34  ;;  %v452_v62 = vpop.f32.mrb[7].mxu0  ;;  %v1367_v63 = vpop.f32.mrb[6].mxu1  ;;  %v513_v13 = vmax.f32 %v483_v10, 0.0 }
  0xfb   : > { %v453_v0 = vadd.f32 %v1219_v34, %v452_v62  ;;  %1382 = vmatprep.mubr.msk.f32.mxu1 %vm307_vm0, %v505_v58  ;;  %v492_v1 = vpop.f32.mrb[7].mxu1  ;;  %v498_v16 = vadd.f32 %v1367_v63, %v1219_v34 }
  0xfc   : > { %v508_v2 = vmax.f32 %v458_v61, 0.0  ;;  %1383 = vmatmul.mubr.msk.f32.gmra.mrb[12].mxu1 %vm307_vm0, %v506_v57  ;;  %v493_v14 = vadd.f32 %v1219_v34, %v492_v1 }
  0xfd   : > { %v507_v4 = vmax.f32 %v453_v0, 0.0  ;;  %v516_v18 = vmax.f32 %v498_v16, 0.0 }
  0xfe   : > { %v515_v17 = vmax.f32 %v493_v14, 0.0 }
  0xff   : > { %1385 = vmatprep.mubr.msk.f32.mxu1 %vm307_vm0, %v507_v4  ;;  %v941_v4 = vlaneseq }
 0x100   : > { %1386 = vmatmul.mubr.msk.f32.gmra.mrb[14].mxu1 %vm307_vm0, %v508_v2 }
 0x101   : > { %1388 = vmatprep.mubr.msk.f32.mxu1 %vm307_vm0, %v509_v5  ;;  %v1832_v5 = vand.u32 127, %v941_v4 }
 0x103   : > { %vm943_vm1 = vcmp.lt.s32.totalorder %v1832_v5, 8 }
 0x104   : > { %1389 = vmatmul.mubr.msk.f32.gmra.mrb[16].mxu1 %vm307_vm0, %v510_v7 }
 0x105   : > { %1391 = vmatprep.mubr.msk.f32.mxu1 %vm307_vm0, %v511_v9 }
 0x108   : > { %1392 = vmatmul.mubr.msk.f32.gmra.mrb[18].mxu1 %vm307_vm0, %v512_v11 }
 0x109   : > { %1394 = vmatprep.mubr.msk.f32.mxu1 %vm307_vm0, %v513_v13 }
 0x10c   : > { %1395 = vmatmul.mubr.msk.f32.gmra.mrb[20].mxu1 %vm307_vm0, %v514_v15 }
 0x10d   : > { %1397 = vmatprep.mubr.msk.f32.mxu1 %vm307_vm0, %v515_v17 }
 0x110   : > { %1398 = vmatmul.mubr.msk.f32.gmra.mrb[22].mxu1 %vm307_vm0, %v516_v18 }
 0x1c7   : > { %v1378_v20 = vpop.f32.mrb[8].mxu1 }
 0x1c8   : > { %v648_v21 = vadd.f32 %v1378_v20, %v1236_v19  ;;  %v642_v22 = vpop.f32.mrb[9].mxu1 }
 0x1c9   : > { %v643_v23 = vadd.f32 %v1236_v19, %v642_v22 }
 0x1ca   : > { %v722_v26 = vmax.f32 %v648_v21, 0.0 }
 0x1cb   : > { %v721_v24 = vmax.f32 %v643_v23, 0.0  ;;  %v1381_v25 = vpop.f32.mrb[10].mxu1 }
 0x1cc   : > { %v658_v27 = vadd.f32 %v1381_v25, %v1236_v19  ;;  %v652_v28 = vpop.f32.mrb[11].mxu1 }
 0x1cd   : > { %v653_v29 = vadd.f32 %v1236_v19, %v652_v28  ;;  %1408 = vmatprep.mubr.msk.f32.mxu0 %vm307_vm0, %v721_v24 }
 0x1ce   : > { %1409 = vmatmul.mubr.msk.f32.vlgmr.msra.gmra.mrb[8].mxu0 %vm307_vm0, %v722_v26  ;;  %v724_v32 = vmax.f32 %v658_v27, 0.0 }
 0x1cf   : > { %v723_v30 = vmax.f32 %v653_v29, 0.0  ;;  %v1384_v31 = vpop.f32.mrb[12].mxu1 }
 0x1d0   : > { %v668_v33 = vadd.f32 %v1384_v31, %v1236_v19  ;;  %v662_v34 = vpop.f32.mrb[13].mxu1 }
 0x1d1   : > { %v663_v35 = vadd.f32 %v1236_v19, %v662_v34  ;;  %1411 = vmatprep.mubr.msk.f32.mxu0 %vm307_vm0, %v723_v30 }
 0x1d2   : > { %v726_v36 = vmax.f32 %v668_v33, 0.0  ;;  %1412 = vmatmul.mubr.msk.f32.gmra.mrb[10].mxu0 %vm307_vm0, %v724_v32 }
 0x1d3   : > { %v725_v37 = vmax.f32 %v663_v35, 0.0  ;;  %v1387_v38 = vpop.f32.mrb[14].mxu1 }
 0x1d4   : > { %v678_v39 = vadd.f32 %v1387_v38, %v1236_v19  ;;  %v672_v40 = vpop.f32.mrb[15].mxu1 }
 0x1d5   : > { %v673_v41 = vadd.f32 %v1236_v19, %v672_v40  ;;  %1414 = vmatprep.mubr.msk.f32.mxu0 %vm307_vm0, %v725_v37 }
 0x1d6   : > { %v728_v42 = vmax.f32 %v678_v39, 0.0  ;;  %1415 = vmatmul.mubr.msk.f32.gmra.mrb[12].mxu0 %vm307_vm0, %v726_v36 }
 0x1d7   : > { %v727_v43 = vmax.f32 %v673_v41, 0.0  ;;  %v1390_v44 = vpop.f32.mrb[16].mxu1 }
 0x1d8   : > { %v688_v45 = vadd.f32 %v1390_v44, %v1236_v19  ;;  %v682_v46 = vpop.f32.mrb[17].mxu1 }
 0x1d9   : > { %v683_v47 = vadd.f32 %v1236_v19, %v682_v46  ;;  %1417 = vmatprep.mubr.msk.f32.mxu0 %vm307_vm0, %v727_v43 }
 0x1da   : > { %v730_v48 = vmax.f32 %v688_v45, 0.0  ;;  %1418 = vmatmul.mubr.msk.f32.gmra.mrb[14].mxu0 %vm307_vm0, %v728_v42 }
 0x1db   : > { %v729_v49 = vmax.f32 %v683_v47, 0.0  ;;  %v1393_v50 = vpop.f32.mrb[18].mxu1 }
 0x1dc   : > { %v698_v51 = vadd.f32 %v1393_v50, %v1236_v19  ;;  %v692_v52 = vpop.f32.mrb[19].mxu1 }
 0x1dd   : > { %v693_v53 = vadd.f32 %v1236_v19, %v692_v52  ;;  %1420 = vmatprep.mubr.msk.f32.mxu0 %vm307_vm0, %v729_v49 }
 0x1de   : > { %v732_v54 = vmax.f32 %v698_v51, 0.0  ;;  %1421 = vmatmul.mubr.msk.f32.gmra.mrb[16].mxu0 %vm307_vm0, %v730_v48 }
 0x1df   : > { %v731_v55 = vmax.f32 %v693_v53, 0.0  ;;  %v1396_v56 = vpop.f32.mrb[20].mxu1 }
 0x1e0   : > { %v708_v57 = vadd.f32 %v1396_v56, %v1236_v19  ;;  %v702_v58 = vpop.f32.mrb[21].mxu1 }
 0x1e1   : > { %v703_v59 = vadd.f32 %v1236_v19, %v702_v58  ;;  %1423 = vmatprep.mubr.msk.f32.mxu0 %vm307_vm0, %v731_v55 }
 0x1e2   : > { %v734_v60 = vmax.f32 %v708_v57, 0.0  ;;  %1424 = vmatmul.mubr.msk.f32.gmra.mrb[18].mxu0 %vm307_vm0, %v732_v54 }
 0x1e3   : > { %v733_v61 = vmax.f32 %v703_v59, 0.0  ;;  %v1399_v62 = vpop.f32.mrb[22].mxu1 }
 0x1e4   : > { %v718_v63 = vadd.f32 %v1399_v62, %v1236_v19  ;;  %v712_v0 = vpop.f32.mrb[23].mxu1 }
 0x1e5   : > { %v713_v1 = vadd.f32 %v1236_v19, %v712_v0  ;;  %1426 = vmatprep.mubr.msk.f32.mxu0 %vm307_vm0, %v733_v61 }
 0x1e6   : > { %v736_v2 = vmax.f32 %v718_v63, 0.0  ;;  %1427 = vmatmul.mubr.msk.f32.gmra.mrb[20].mxu0 %vm307_vm0, %v734_v60 }
 0x1e7   : > { %v735_v3 = vmax.f32 %v713_v1, 0.0 }
 0x1e9   : > { %1429 = vmatprep.mubr.msk.f32.mxu0 %vm307_vm0, %v735_v3 }
 0x1ea   : > { %1430 = vmatmul.mubr.msk.f32.gmra.mrb[22].mxu0 %vm307_vm0, %v736_v2 }
 0x2a1   : > { %v1410_v7 = vpop.f32.mrb[8].mxu0 }
 0x2a2   : > { %v868_v8 = vadd.f32 %v1410_v7, %v1253_v6  ;;  %v862_v9 = vpop.f32.mrb[9].mxu0 }
 0x2a3   : > { %v863_v10 = vadd.f32 %v1253_v6, %v862_v9 }
 0x2a4   : > { %v945_v11 = vsel %vm943_vm1, %v868_v8, -1e+30 }
 0x2a5   : > { %962 = vmax.xlane.f32.xlu0 %v945_v11  ;;  %v1413_v12 = vpop.f32.mrb[10].mxu0  ;;  %v944_v17 = vsel %vm943_vm1, %v863_v10, -1e+30 }
 0x2a6   : > { %v878_v13 = vadd.f32 %v1413_v12, %v1253_v6  ;;  %v872_v14 = vpop.f32.mrb[11].mxu0 }
 0x2a7   : > { %v873_v15 = vadd.f32 %v1253_v6, %v872_v14 }
 0x2a8   : > { %v947_v16 = vsel %vm943_vm1, %v878_v13, -1e+30 }
 0x2a9   : > { %966 = vmax.xlane.f32.xlu1 %v947_v16  ;;  %v1416_v18 = vpop.f32.mrb[12].mxu0  ;;  %960 = vmax.xlane.f32.xlu0 %v944_v17  ;;  %v946_v22 = vsel %vm943_vm1, %v873_v15, -1e+30 }
 0x2aa   : > { %v882_v19 = vpop.f32.mrb[13].mxu0  ;;  %v888_v21 = vadd.f32 %v1416_v18, %v1253_v6 }
 0x2ab   : > { %v883_v20 = vadd.f32 %v1253_v6, %v882_v19 }
 0x2ac   : > { %v949_v28 = vsel %vm943_vm1, %v888_v21, -1e+30 }
 0x2ad   : > { %v1419_v23 = vpop.f32.mrb[14].mxu0  ;;  %964 = vmax.xlane.f32.xlu1 %v946_v22  ;;  %v948_v24 = vsel %vm943_vm1, %v883_v20, -1e+30 }
 0x2ae   : > { %v892_v25 = vpop.f32.mrb[15].mxu0  ;;  %968 = vmax.xlane.f32.xlu0 %v948_v24  ;;  %v898_v27 = vadd.f32 %v1419_v23, %v1253_v6 }
 0x2af   : > { %v893_v26 = vadd.f32 %v1253_v6, %v892_v25 }
 0x2b0   : > { %v951_v34 = vsel %vm943_vm1, %v898_v27, -1e+30 }
 0x2b1   : > { %v1422_v29 = vpop.f32.mrb[16].mxu0  ;;  %970 = vmax.xlane.f32.xlu1 %v949_v28  ;;  %v950_v30 = vsel %vm943_vm1, %v893_v26, -1e+30 }
 0x2b2   : > { %v902_v31 = vpop.f32.mrb[17].mxu0  ;;  %972 = vmax.xlane.f32.xlu0 %v950_v30  ;;  %v908_v33 = vadd.f32 %v1422_v29, %v1253_v6 }
 0x2b3   : > { %v903_v32 = vadd.f32 %v1253_v6, %v902_v31 }
 0x2b4   : > { %v953_v40 = vsel %vm943_vm1, %v908_v33, -1e+30 }
 0x2b5   : > { %v1425_v35 = vpop.f32.mrb[18].mxu0  ;;  %974 = vmax.xlane.f32.xlu1 %v951_v34  ;;  %v952_v36 = vsel %vm943_vm1, %v903_v32, -1e+30 }
 0x2b6   : > { %v912_v37 = vpop.f32.mrb[19].mxu0  ;;  %976 = vmax.xlane.f32.xlu0 %v952_v36  ;;  %v918_v39 = vadd.f32 %v1425_v35, %v1253_v6 }
 0x2b7   : > { %v913_v38 = vadd.f32 %v1253_v6, %v912_v37 }
 0x2b8   : > { %v1865_v46 = vsel %vm943_vm1, %v918_v39, -1e+30 }
 0x2b9   : > { %v1428_v41 = vpop.f32.mrb[20].mxu0  ;;  %978 = vmax.xlane.f32.xlu1 %v953_v40  ;;  %v1860_v42 = vsel %vm943_vm1, %v913_v38, -1e+30 }
 0x2ba   : > { %v922_v43 = vpop.f32.mrb[21].mxu0  ;;  %980 = vmax.xlane.f32.xlu0 %v1860_v42  ;;  %v928_v45 = vadd.f32 %v1428_v41, %v1253_v6 }
 0x2bb   : > { %v923_v44 = vadd.f32 %v1253_v6, %v922_v43 }
 0x2bc   : > { %v1875_v52 = vsel %vm943_vm1, %v928_v45, -1e+30 }
 0x2bd   : > { %v1431_v47 = vpop.f32.mrb[22].mxu0  ;;  %982 = vmax.xlane.f32.xlu1 %v1865_v46  ;;  %v1870_v48 = vsel %vm943_vm1, %v923_v44, -1e+30 }
 0x2be   : > { %v932_v49 = vpop.f32.mrb[23].mxu0  ;;  %984 = vmax.xlane.f32.xlu0 %v1870_v48  ;;  %v938_v51 = vadd.f32 %v1431_v47, %v1253_v6 }
 0x2bf   : > { %v933_v50 = vadd.f32 %v1253_v6, %v932_v49 }
 0x2c0   : > { %v1885_v54 = vsel %vm943_vm1, %v938_v51, -1e+30 }
 0x2c1   : > { %986 = vmax.xlane.f32.xlu1 %v1875_v52  ;;  %v1880_v53 = vsel %vm943_vm1, %v933_v50, -1e+30 }
 0x2c2   : > { %988 = vmax.xlane.f32.xlu0 %v1880_v53 }
 0x2c5   : > { %990 = vmax.xlane.f32.xlu1 %v1885_v54 }
 0x332   : > { %v963_v55 = vpop.xlane.xlu0 %962 }
 0x333   : > { %v1888_v56 = vsub.f32 %v945_v11, %v963_v55 }
 0x335   : > { %v1010_v57 = vmul.f32 1.442695, %v1888_v56 }
 0x336   : > { %v967_v58 = vpop.xlane.xlu1 %966  ;;  %v961_v59 = vpop.xlane.xlu0 %960 }
 0x337   : > { %1501 = vpow2.f32 %v1010_v57  ;;  %v1891_v60 = vsub.f32 %v947_v16, %v967_v58  ;;  %v1893_v61 = vsub.f32 %v944_v17, %v961_v59 }
 0x339   : > { %v1014_v62 = vmul.f32 1.442695, %v1891_v60  ;;  %v1008_v63 = vmul.f32 1.442695, %v1893_v61 }
 0x33a   : > { %v965_v0 = vpop.xlane.xlu1 %964 }
 0x33b   : > { %1503 = vpow2.f32 %v1014_v62  ;;  %v1897_v1 = vsub.f32 %v946_v22, %v965_v0  ;;  %v969_v2 = vpop.xlane.xlu0 %968 }
 0x33c   : > { %1505 = vpow2.f32 %v1008_v63  ;;  %v1899_v3 = vsub.f32 %v948_v24, %v969_v2 }
 0x33d   : > { %v1012_v4 = vmul.f32 1.442695, %v1897_v1 }
 0x33e   : > { %v971_v5 = vpop.xlane.xlu1 %970  ;;  %v1016_v8 = vmul.f32 1.442695, %v1899_v3 }
 0x33f   : > { %1507 = vpow2.f32 %v1012_v4  ;;  %v1902_v6 = vsub.f32 %v949_v28, %v971_v5  ;;  %v973_v7 = vpop.xlane.xlu0 %972 }
 0x340   : > { %v1905_v9 = vsub.f32 %v950_v30, %v973_v7 }
 0x341   : > { %v1502_v10 = vpop.eup %1501  ;;  %v1018_v11 = vmul.f32 1.442695, %v1902_v6 }
 0x342   : > { %1042 = vadd.xlane.f32.xlu1 %v1502_v10  ;;  %v975_v12 = vpop.xlane.xlu1 %974  ;;  %v1020_v15 = vmul.f32 1.442695, %v1905_v9 }
 0x343   : > { %1509 = vpow2.f32 %v1018_v11  ;;  %v1908_v13 = vsub.f32 %v951_v34, %v975_v12  ;;  %v977_v14 = vpop.xlane.xlu0 %976 }
 0x344   : > { %1511 = vpow2.f32 %v1016_v8  ;;  %v1911_v16 = vsub.f32 %v952_v36, %v977_v14 }
 0x345   : > { %v1504_v17 = vpop.eup %1503  ;;  %v1022_v18 = vmul.f32 1.442695, %v1908_v13 }
 0x346   : > { %v1506_v19 = vpop.eup %1505  ;;  %1046 = vadd.xlane.f32.xlu1 %v1504_v17  ;;  %v979_v20 = vpop.xlane.xlu1 %978  ;;  %v1024_v23 = vmul.f32 1.442695, %v1911_v16 }
 0x347   : > { %1513 = vpow2.f32 %v1022_v18  ;;  %v1914_v21 = vsub.f32 %v953_v40, %v979_v20  ;;  %1040 = vadd.xlane.f32.xlu0 %v1506_v19  ;;  %v981_v22 = vpop.xlane.xlu0 %980 }
 0x348   : > { %1515 = vpow2.f32 %v1020_v15  ;;  %v1918_v24 = vsub.f32 %v1860_v42, %v981_v22 }
 0x349   : > { %v1508_v25 = vpop.eup %1507  ;;  %v1026_v26 = vmul.f32 1.442695, %v1914_v21 }
 0x34a   : > { %v983_v27 = vpop.xlane.xlu1 %982  ;;  %v1028_v30 = vmul.f32 1.442695, %v1918_v24 }
 0x34b   : > { %1517 = vpow2.f32 %v1026_v26  ;;  %v1922_v28 = vsub.f32 %v1865_v46, %v983_v27  ;;  %1044 = vadd.xlane.f32.xlu0 %v1508_v25  ;;  %v985_v29 = vpop.xlane.xlu0 %984 }
 0x34c   : > { %1519 = vpow2.f32 %v1024_v23  ;;  %v1926_v31 = vsub.f32 %v1870_v48, %v985_v29 }
 0x34d   : > { %v1510_v32 = vpop.eup %1509  ;;  %v1030_v33 = vmul.f32 1.442695, %v1922_v28 }
 0x34e   : > { %v1512_v34 = vpop.eup %1511  ;;  %1050 = vadd.xlane.f32.xlu1 %v1510_v32  ;;  %v987_v35 = vpop.xlane.xlu1 %986  ;;  %v1032_v38 = vmul.f32 1.442695, %v1926_v31 }
 0x34f   : > { %1521 = vpow2.f32 %v1030_v33  ;;  %v1930_v36 = vsub.f32 %v1875_v52, %v987_v35  ;;  %1048 = vadd.xlane.f32.xlu0 %v1512_v34  ;;  %v989_v37 = vpop.xlane.xlu0 %988 }
 0x350   : > { %1523 = vpow2.f32 %v1028_v30  ;;  %v1934_v39 = vsub.f32 %v1880_v53, %v989_v37 }
 0x351   : > { %v1514_v40 = vpop.eup %1513  ;;  %v1034_v41 = vmul.f32 1.442695, %v1930_v36 }
 0x352   : > { %v1516_v42 = vpop.eup %1515  ;;  %1054 = vadd.xlane.f32.xlu1 %v1514_v40  ;;  %v991_v43 = vpop.xlane.xlu1 %990  ;;  %v1036_v45 = vmul.f32 1.442695, %v1934_v39 }
 0x353   : > { %1525 = vpow2.f32 %v1034_v41  ;;  %v1938_v44 = vsub.f32 %v1885_v54, %v991_v43  ;;  %1052 = vadd.xlane.f32.xlu0 %v1516_v42 }
 0x354   : > { %1527 = vpow2.f32 %v1032_v38 }
 0x355   : > { %v1518_v46 = vpop.eup %1517  ;;  %v1038_v47 = vmul.f32 1.442695, %v1938_v44 }
 0x356   : > { %v1520_v48 = vpop.eup %1519  ;;  %1058 = vadd.xlane.f32.xlu1 %v1518_v46 }
 0x357   : > { %1529 = vpow2.f32 %v1038_v47  ;;  %1056 = vadd.xlane.f32.xlu0 %v1520_v48 }
 0x358   : > { %1531 = vpow2.f32 %v1036_v45 }
 0x359   : > { %v1522_v49 = vpop.eup %1521 }
 0x35a   : > { %v1524_v50 = vpop.eup %1523  ;;  %1062 = vadd.xlane.f32.xlu1 %v1522_v49 }
 0x35b   : > { %1060 = vadd.xlane.f32.xlu0 %v1524_v50 }
 0x35d   : > { %v1526_v51 = vpop.eup %1525 }
 0x35e   : > { %v1528_v52 = vpop.eup %1527  ;;  %1066 = vadd.xlane.f32.xlu1 %v1526_v51 }
 0x35f   : > { %1064 = vadd.xlane.f32.xlu0 %v1528_v52 }
 0x361   : > { %v1530_v53 = vpop.eup %1529 }
 0x362   : > { %v1532_v54 = vpop.eup %1531  ;;  %1070 = vadd.xlane.f32.xlu1 %v1530_v53 }
 0x363   : > { %1068 = vadd.xlane.f32.xlu0 %v1532_v54 }
 0x3cf   : > { %v1043_v55 = vpop.xlane.xlu1 %1042 }
 0x3d0   : > { %1533 = vlog2.f32 %v1043_v55 }
 0x3d3   : > { %v1047_v57 = vpop.xlane.xlu1 %1046 }
 0x3d4   : > { %1535 = vlog2.f32 %v1047_v57  ;;  %v1041_v58 = vpop.xlane.xlu0 %1040 }
 0x3d5   : > { %1537 = vlog2.f32 %v1041_v58 }
 0x3d8   : > { %v1045_v59 = vpop.xlane.xlu0 %1044 }
 0x3d9   : > { %1539 = vlog2.f32 %v1045_v59 }
 0x3da   : > { %v1534_v62 = vpop.eup %1533 }
 0x3db   : > { %v1075_v63 = vmul.f32 0.6931472, %v1534_v62  ;;  %v1051_v0 = vpop.xlane.xlu1 %1050 }
 0x3dc   : > { %1541 = vlog2.f32 %v1051_v0  ;;  %v1049_v2 = vpop.xlane.xlu0 %1048 }
 0x3dd   : > { %v1105_v4 = vsub.f32 %v1888_v56, %v1075_v63  ;;  %1543 = vlog2.f32 %v1049_v2 }
 0x3de   : > { %v1536_v5 = vpop.eup %1535 }
 0x3df   : > { %v1538_v7 = vpop.eup %1537  ;;  %1121 = vst [vmem:[%s1946_s22 + $0x8] sm:$0xff] %v1105_v4  ;;  %v1079_v8 = vmul.f32 0.6931472, %v1536_v5  ;;  %v1055_v10 = vpop.xlane.xlu1 %1054 }
 0x3e0   : > { %v1073_v11 = vmul.f32 0.6931472, %v1538_v7  ;;  %1545 = vlog2.f32 %v1055_v10  ;;  %v1053_v12 = vpop.xlane.xlu0 %1052 }
 0x3e1   : > { %v1107_v14 = vsub.f32 %v1891_v60, %v1079_v8  ;;  %1547 = vlog2.f32 %v1053_v12 }
 0x3e2   : > { %v1104_v56 = vsub.f32 %v1893_v61, %v1073_v11 }
 0x3e3   : > { %v1540_v15 = vpop.eup %1539  ;;  %1123 = vst [vmem:[%s1946_s22 + $0x18] sm:$0xff] %v1107_v14  ;;  %v1059_v17 = vpop.xlane.xlu1 %1058 }
 0x3e4   : > { %1120 = vst [vmem:[%s1946_s22] sm:$0xff] %v1104_v56  ;;  %v1077_v18 = vmul.f32 0.6931472, %v1540_v15  ;;  %1549 = vlog2.f32 %v1059_v17  ;;  %v1057_v19 = vpop.xlane.xlu0 %1056 }
 0x3e5   : > { %1551 = vlog2.f32 %v1057_v19 }
 0x3e6   : > { %v1542_v20 = vpop.eup %1541  ;;  %v1106_v22 = vsub.f32 %v1897_v1, %v1077_v18 }
 0x3e7   : > { %v1544_v23 = vpop.eup %1543  ;;  %v1083_v25 = vmul.f32 0.6931472, %v1542_v20  ;;  %v1063_v60 = vpop.xlane.xlu1 %1062 }
 0x3e8   : > { %1122 = vst [vmem:[%s1946_s22 + $0x10] sm:$0xff] %v1106_v22  ;;  %v1081_v26 = vmul.f32 0.6931472, %v1544_v23  ;;  %1553 = vlog2.f32 %v1063_v60  ;;  %v1061_v61 = vpop.xlane.xlu0 %1060 }
 0x3e9   : > { %v1109_v27 = vsub.f32 %v1902_v6, %v1083_v25  ;;  %1555 = vlog2.f32 %v1061_v61 }
 0x3ea   : > { %v1546_v29 = vpop.eup %1545  ;;  %v1108_v30 = vsub.f32 %v1899_v3, %v1081_v26 }
 0x3eb   : > { %v1548_v32 = vpop.eup %1547  ;;  %1125 = vst [vmem:[%s1946_s22 + $0x28] sm:$0xff] %v1109_v27  ;;  %v1087_v33 = vmul.f32 0.6931472, %v1546_v29  ;;  %v1067_v1 = vpop.xlane.xlu1 %1066 }
 0x3ec   : > { %1124 = vst [vmem:[%s1946_s22 + $0x20] sm:$0xff] %v1108_v30  ;;  %v1085_v34 = vmul.f32 0.6931472, %v1548_v32  ;;  %1557 = vlog2.f32 %v1067_v1  ;;  %v1065_v35 = vpop.xlane.xlu0 %1064 }
 0x3ed   : > { %v1111_v37 = vsub.f32 %v1908_v13, %v1087_v33  ;;  %1559 = vlog2.f32 %v1065_v35 }
 0x3ee   : > { %v1550_v38 = vpop.eup %1549  ;;  %v1110_v6 = vsub.f32 %v1905_v9, %v1085_v34 }
 0x3ef   : > { %v1552_v40 = vpop.eup %1551  ;;  %1127 = vst [vmem:[%s1946_s22 + $0x38] sm:$0xff] %v1111_v37  ;;  %v1091_v3 = vmul.f32 0.6931472, %v1550_v38  ;;  %v1071_v41 = vpop.xlane.xlu1 %1070 }
 0x3f0   : > { %1126 = vst [vmem:[%s1946_s22 + $0x30] sm:$0xff] %v1110_v6  ;;  %v1089_v42 = vmul.f32 0.6931472, %v1552_v40  ;;  %1561 = vlog2.f32 %v1071_v41  ;;  %v1069_v43 = vpop.xlane.xlu0 %1068 }
 0x3f1   : > { %v1113_v45 = vsub.f32 %v1914_v21, %v1091_v3  ;;  %1563 = vlog2.f32 %v1069_v43 }
 0x3f2   : > { %v1554_v13 = vpop.eup %1553  ;;  %v1112_v46 = vsub.f32 %v1911_v16, %v1089_v42 }
 0x3f3   : > { %v1556_v47 = vpop.eup %1555  ;;  %1129 = vst [vmem:[%s1946_s22 + $0x48] sm:$0xff] %v1113_v45  ;;  %v1095_v9 = vmul.f32 0.6931472, %v1554_v13 }
 0x3f4   : > { %1128 = vst [vmem:[%s1946_s22 + $0x40] sm:$0xff] %v1112_v46  ;;  %v1093_v48 = vmul.f32 0.6931472, %v1556_v47 }
 0x3f5   : > { %v1115_v49 = vsub.f32 %v1922_v28, %v1095_v9 }
 0x3f6   : > { %v1558_v50 = vpop.eup %1557  ;;  %v1114_v51 = vsub.f32 %v1918_v24, %v1093_v48 }
 0x3f7   : > { %v1560_v52 = vpop.eup %1559  ;;  %1131 = vst [vmem:[%s1946_s22 + $0x58] sm:$0xff] %v1115_v49  ;;  %v1099_v21 = vmul.f32 0.6931472, %v1558_v50 }
 0x3f8   : > { %1130 = vst [vmem:[%s1946_s22 + $0x50] sm:$0xff] %v1114_v51  ;;  %v1097_v16 = vmul.f32 0.6931472, %v1560_v52 }
 0x3f9   : > { %v1117_v53 = vsub.f32 %v1930_v36, %v1099_v21 }
 0x3fa   : > { %v1562_v54 = vpop.eup %1561  ;;  %v1116_v55 = vsub.f32 %v1926_v31, %v1097_v16 }
 0x3fb   : > { %v1564_v28 = vpop.eup %1563  ;;  %1133 = vst [vmem:[%s1946_s22 + $0x68] sm:$0xff] %v1117_v53  ;;  %v1103_v57 = vmul.f32 0.6931472, %v1562_v54 }
 0x3fc   : > { %1132 = vst [vmem:[%s1946_s22 + $0x60] sm:$0xff] %v1116_v55  ;;  %v1101_v24 = vmul.f32 0.6931472, %v1564_v28 }
 0x3fd   : > { %v1119_v58 = vsub.f32 %v1938_v44, %v1103_v57 }
 0x3fe   : > { %v1118_v31 = vsub.f32 %v1934_v39, %v1101_v24 }
 0x3ff   : > { %1135 = vst [vmem:[%s1946_s22 + $0x78] sm:$0xff] %v1119_v58 }
 0x400   : > { %1134 = vst [vmem:[%s1946_s22 + $0x70] sm:$0xff] %v1118_v31 }
 0x401   : > { %1578 = shalt.err (!%p1575_p3)
}
 0x402   : > { %s1579_s18 = scalar_lea.hbm %s1981_s13, 2048  ;;  %s1583_s21 = scalar_lea.hbm %s2038_s7, 4096 }
 0x403   : > { %p1580_p4 = scmp.ne.s32.totalorder %s1981_s13, %s1579_s18  ;;  %p1584_p9 = scmp.lt.u32.totalorder %s1981_s13, %s2038_s7 }
 0x404   : > { %p1585_p10 = scmp.lt.u32.totalorder %s1583_s21, %s1579_s18  ;;  %p1587_p12 = scmp.lt.u32.totalorder %s1579_s18, %s1981_s13 }
 0x405   : > { %p1581_p7 = pnand %p1580_p4, %p1710_p5 }
 0x406   : > { %p1586_p11 = por %p1585_p10, %p1584_p9 }
 0x407   : > { %p1582_p8 = pneg %p1581_p7 }
 0x408   : > { %p1588_p13 = por %p1587_p12, %p1586_p11 }
 0x40a   : > { %p1589_p0 = pnand %p1588_p13, %p1582_p8 }
 0x40c   : > { %1592 = shalt.err (!%p1589_p0)
}
 0x40d   : > { %s1630_s8 = smov 128   ;;  %s1631_s9 = smov 8  }
 0x40e   : > { %1460 = dma.vmem_to_hbm [thread:$0]  (%p1710_p5), %s1983_s29, 2048, %s1981_s13, %s1990_s28, %s1630_s8, %s1630_s8, %s1631_s9  }
 0x40f PF: > { %p1466_p1 = scmp.ge.s32.totalorder %s1627_s27, 2  ;;  %s1165_s14 = sand.u32 1, %s1615_s24  }
 0x410   : > { %s1166_s15 = scalar_lea.sflag [#allocation3], %s1165_s14 }
 0x411   : > { %p1463_p2 = pnand %p1466_p1, %p1714_p6 }
 0x413   : > { %1610 = dma.done.wait (!%p1463_p2), %s1166_s15, 2048  }
 0x414   : > { %1612 = vsyncadd (!%p1463_p2), %s1166_s15, 4294965248  ;;  %p17_p3 = scmp.ge.s32.totalorder %s1697_s30, 4   ;;  %s2041_s24 = smov %s1619_s25 }
 0x415   : > { %s2042_s25 = smov %s1623_s26  ;;  %s2043_s26 = smov %s1708_s10 }
 0x416   : > { %s2044_s27 = smov %s1697_s30  ;;  %19 = sbr.rel (!%p17_p3) target bundleno = 3 (0x3), region = 83 }
 0x41d   :  { %1171 = vsyncpa [#allocation3], 1 }
 0x41e   :  { %1173 = vsyncpa [#allocation3 + $0x1], 1 }

</bundles_post_ra>
